<compile_context>
chip_gen: v5e
topology: v5e:2x2
jax: 0.10.0
libtpu: 0.0.40
codegen_flags: <defaults>
</compile_context>

<pallas_src>
import jax
import jax.numpy as jnp
from jax.experimental import pallas as pl
from jax.experimental.pallas import tpu as pltpu


def linear_double_relu_kernel(x_ref, w_ref, b_ref, o_ref):
    # MXU: bf16 operands (W arrives pre-cast), f32 accumulation.
    x_bf = x_ref[...].astype(jnp.bfloat16)          # (1, K): single-vreg cast
    y = jnp.dot(x_bf, w_ref[...], preferred_element_type=jnp.float32)
    # relu(2*(xW + b)) == 2*relu(xW + b): add, max, mul -- all f32 on the VPU.
    o_ref[...] = (jnp.maximum(y + b_ref[...], 0.0) * 2.0).astype(o_ref.dtype)


def prepare_params(w_f32, b_f32):
    """One-time parameter prep: quantize W to bf16, keep bias f32 as (1, N)."""
    w_bf16 = w_f32.astype(jnp.bfloat16)
    b = b_f32.reshape(1, -1).astype(jnp.float32)
    return w_bf16, b


def linear_double_relu(x, w_bf16, b):
    """x: (M, K) f32, w_bf16: (K, N) bf16, b: (N,) or (1, N) f32 -> (M, N) f32."""
    M, K = x.shape
    K2, N = w_bf16.shape
    assert K == K2
    if b.ndim == 1:
        b = b.reshape(1, N)
    assert b.shape == (1, N)

    # f32 x + f32 out + f32 bias, bf16 W.
    bytes_accessed = 4 * (M * K + N + M * N) + 2 * (K * N)
    return pl.pallas_call(
        linear_double_relu_kernel,
        out_shape=jax.ShapeDtypeStruct((M, N), jnp.float32),
        # Gridless: whole arrays resident in VMEM, no pipeline machinery.
        in_specs=[
            pl.BlockSpec(memory_space=pltpu.MemorySpace.VMEM),
            pl.BlockSpec(memory_space=pltpu.MemorySpace.VMEM),
            pl.BlockSpec(memory_space=pltpu.MemorySpace.VMEM),
        ],
        out_specs=pl.BlockSpec(memory_space=pltpu.MemorySpace.VMEM),
        cost_estimate=pl.CostEstimate(
            flops=2 * M * K * N,
            transcendentals=0,
            bytes_accessed=bytes_accessed,
        ),
    )(x, w_bf16, b)


if __name__ == "__main__":
    key = jax.random.PRNGKey(0)
    k_x, k_w, k_b = jax.random.split(key, 3)

    IN_F, OUT_F = 64, 256

    # Input matching the module: x1 = torch.randn(1, 64)
    x = jax.random.normal(k_x, (1, IN_F), dtype=jnp.float32)

    # Deterministic parameter init mimicking torch.nn.Linear defaults:
    # U(-1/sqrt(in_features), 1/sqrt(in_features))
    bound = 1.0 / (IN_F ** 0.5)
    w = jax.random.uniform(k_w, (IN_F, OUT_F), minval=-bound, maxval=bound,
                           dtype=jnp.float32)
    b = jax.random.uniform(k_b, (OUT_F,), minval=-bound, maxval=bound,
                           dtype=jnp.float32)

    w_bf16, b2d = prepare_params(w, b)

    out = linear_double_relu(x, w_bf16, b2d)
    out = jax.block_until_ready(out)
    assert out.shape == (1, OUT_F)

    # Reference with matching bf16 operand quantization (f32 accumulate).
    x_q = x.astype(jnp.bfloat16).astype(jnp.float32)
    w_q = w.astype(jnp.bfloat16).astype(jnp.float32)
    ref = jnp.maximum(2.0 * (x_q @ w_q + b2d), 0.0)
    assert jnp.allclose(out, ref, atol=1e-4, rtol=1e-4)

    # Sanity check against the full-precision formula (bf16 operand error only).
    # TODO(synk): if bit-parity with the f32 torch Linear is required, keep f32
    # MXU operands (multi-pass, ~3-4x slower per matmul) instead of bf16.
    ref_f32 = jnp.maximum(2.0 * (x @ w + b2d), 0.0)
    assert jnp.allclose(out, ref_f32, atol=5e-2, rtol=5e-2)

    print("KERNEL_OK")
</pallas_src>

<mosaic_0001>
module attributes {stable_mosaic.version = 11 : i64} {
  func.func @linear_double_relu_kernel(%arg0: memref<1x64xf32, #tpu.memory_space<vmem>>, %arg1: memref<64x256xbf16, #tpu.memory_space<vmem>>, %arg2: memref<1x256xf32, #tpu.memory_space<vmem>>, %arg3: memref<1x256xf32, #tpu.memory_space<vmem>>) attributes {dimension_semantics = [], scalar_prefetch = 0 : i64, scratch_operands = 0 : i64, tpu.core_type = #tpu.core_type<tc>} {
    %c0 = arith.constant 0 : index
    %c0_0 = arith.constant 0 : index
    %0 = vector.load %arg0[%c0, %c0_0] : memref<1x64xf32, #tpu.memory_space<vmem>>, vector<1x64xf32>
    %1 = arith.truncf %0 : vector<1x64xf32> to vector<1x64xbf16>
    %c0_1 = arith.constant 0 : index
    %c0_2 = arith.constant 0 : index
    %2 = vector.load %arg1[%c0_1, %c0_2] : memref<64x256xbf16, #tpu.memory_space<vmem>>, vector<64x256xbf16>
    %cst = arith.constant dense<0.000000e+00> : vector<1x256xf32>
    %3 = tpu.matmul %1, %2, %cst {dimension_numbers = #tpu.dot_dimension_numbers<[1], [0], [0], [1], [0, 0, 1, 1], [], []>} : vector<1x64xbf16>, vector<64x256xbf16>, vector<1x256xf32> -> vector<1x256xf32>
    %c0_3 = arith.constant 0 : index
    %c0_4 = arith.constant 0 : index
    %4 = vector.load %arg2[%c0_3, %c0_4] : memref<1x256xf32, #tpu.memory_space<vmem>>, vector<1x256xf32>
    %5 = arith.addf %3, %4 : vector<1x256xf32>
    %cst_5 = arith.constant 0.000000e+00 : f32
    %6 = vector.broadcast %cst_5 : f32 to vector<1x256xf32>
    %7 = arith.maximumf %5, %6 : vector<1x256xf32>
    %cst_6 = arith.constant 2.000000e+00 : f32
    %8 = vector.broadcast %cst_6 : f32 to vector<1x256xf32>
    %9 = arith.mulf %7, %8 : vector<1x256xf32>
    %c0_7 = arith.constant 0 : index
    %c0_8 = arith.constant 0 : index
    %10 = vector.load %arg3[%c0_7, %c0_8] : memref<1x256xf32, #tpu.memory_space<vmem>>, vector<1x256xf32>
    tpu.vector_store %arg3[%c0_7, %c0_8], %9 {strides = array<i32>} : memref<1x256xf32, #tpu.memory_space<vmem>>, vector<1x256xf32>,
    return
  }
}

</mosaic_0001>

<bundles_post_ra>
// kernel: tpu_custom_call.1
= control target key start
LH: loop header
LB: loop body
LE: loop exit
PB: predicated region body
PF: predicated region fallthrough
CT: control target
= control target key end

     0   :  { %8 = vsyncpa [#allocation3], 0  ;;  %s366_s0 = inlined_call_operand.hbm [shape: f32[1,64], index: 0, kind: input, shape index: {}]   ;;  %s367_s1 = inlined_call_operand.hbm [shape: bf16[64,256], index: 1, kind: input, shape index: {}]   ;;  %s368_s2 = inlined_call_operand.hbm [shape: f32[1,256], index: 2, kind: input, shape index: {}]   ;;  %s369_s3 = inlined_call_operand.hbm [shape: f32[1,256], index: 3, kind: output, shape index: {}]  }
   0x1   :  { %9 = vsyncpa [#allocation6], 0  ;;  %s26_s14 = sshll.u32 %s367_s1, 4  ;;  %s27_s14 = int_to_ptr.hbm [resolvable:$true] %s26_s14 }
   0x2   :  { %10 = vsyncpa [#allocation4], 0  ;;  %s328_s15 = smov [#allocation5]   ;;  %s16_s19 = sshll.u32 %s366_s0, 4  ;;  %s17_s19 = int_to_ptr.hbm [resolvable:$true] %s16_s19 }
   0x3   :  { %s28_s16 = sshll.u32 %s328_s15, 4  ;;  %s329_s20 = smov 128   ;;  %s29_s16 = int_to_ptr.vmem [resolvable:$true] %s28_s16 }
   0x4   :  { %s330_s21 = smov 8   ;;  %s331_s22 = smov [#allocation2]  }
   0x5   :  { %34 = dma.hbm_to_vmem [thread:$0]  %s27_s14, 1024, %s29_s16, [#allocation6], %s329_s20, %s329_s20, %s330_s21  }
   0x6   :  { %s18_s23 = sshll.u32 %s331_s22, 4  ;;  %s40_s26 = sshll.u32 %s368_s2, 4  ;;  %s19_s23 = int_to_ptr.vmem [resolvable:$true] %s18_s23  ;;  %s41_s26 = int_to_ptr.hbm [resolvable:$true] %s40_s26 }
   0x7   :  { %21 = dma.hbm_to_vmem [thread:$0]  %s17_s19, 16, %s19_s23, [#allocation3]  }
   0x8   :  { %s332_s1 = smov [#allocation7]  }
   0x9   :  { %s42_s27 = sshll.u32 %s332_s1, 4  ;;  %s43_s27 = int_to_ptr.vmem [resolvable:$true] %s42_s27 }
   0xa   :  { %45 = dma.hbm_to_vmem [thread:$0]  %s41_s26, 32, %s43_s27, [#allocation6]  }
   0xb   :  { %322 = dma.done.wait [#allocation3], 16  }
   0xc   :  { %323 = vsyncadd [#allocation3], 4294967280 }
   0xd   :  { %324 = dma.done.wait [#allocation6], 1056  }
   0xe   :  { %325 = vsyncadd [#allocation6], 4294966240  ;;  %v204_v0 = vld [vmem:[#allocation5 + $0x30] sm:$0xf]  ;;  %v219_v1 = vld [vmem:[#allocation5 + $0x34] sm:$0xf0]  ;;  %v155_v35 = vlaneseq }
   0xf   :  { %v218_v2 = vld [vmem:[#allocation5 + $0x34] sm:$0xf]  ;;  %v205_v3 = vor.u32 %v219_v1, %v204_v0  ;;  %v206_v4 = vld [vmem:[#allocation5 + $0x38] sm:$0xf0]  ;;  %v196_v5 = vld [vmem:[#allocation5 + $0x20] sm:$0xf] }
  0x10   :  { %v217_v6 = vld [vmem:[#allocation5 + $0x24] sm:$0xf0]  ;;  %v209_v7 = vor.u32 %v218_v2, %v206_v4  ;;  %v216_v8 = vld [vmem:[#allocation5 + $0x24] sm:$0xf]  ;;  %v198_v9 = vld [vmem:[#allocation5 + $0x28] sm:$0xf0] }
  0x11   :  { %123 = vmatpush.bf16.msra.mxu0 %v205_v3  ;;  %v197_v10 = vor.u32 %v217_v6, %v196_v5  ;;  %v201_v11 = vor.u32 %v216_v8, %v198_v9  ;;  %v188_v12 = vld [vmem:[#allocation5 + $0x10] sm:$0xf]  ;;  %v215_v13 = vld [vmem:[#allocation5 + $0x14] sm:$0xf0]  ;;  %v214_v14 = vld [vmem:[#allocation5 + $0x14] sm:$0xf] }
  0x12   :  { %136 = vmatpush.bf16.msra.mxu1 %v209_v7  ;;  %v190_v15 = vld [vmem:[#allocation5 + $0x18] sm:$0xf0]  ;;  %v189_v16 = vor.u32 %v215_v13, %v188_v12  ;;  %v180_v18 = vld [vmem:[#allocation5] sm:$0xf]  ;;  %v213_v19 = vld [vmem:[#allocation5 + $0x4] sm:$0xf0] }
  0x13   :  { %v193_v17 = vor.u32 %v214_v14, %v190_v15  ;;  %v212_v20 = vld [vmem:[#allocation5 + $0x4] sm:$0xf]  ;;  %v182_v21 = vld [vmem:[#allocation5 + $0x8] sm:$0xf0]  ;;  %v181_v22 = vor.u32 %v213_v19, %v180_v18  ;;  %v59_v23 = vld [vmem:[#allocation2] sm:$0x1] }
  0x14   :  { %v185_v24 = vor.u32 %v212_v20, %v182_v21  ;;  %v60_v25 = vpack.c.bf16 %v59_v23, %v59_v23  ;;  %vm115_vm0 = vcmask 523264   ;;  %v69_v26 = vld [vmem:[#allocation7] sm:$0x3]  ;;  %s333_s0 = smov [#allocation8]   ;;  %s167_s30 = sshll.u32 %s369_s3, 4  ;;  %vm152_vm1 = vcmask 1040384   ;;  %s168_s30 = int_to_ptr.hbm [resolvable:$true] %s167_s30 }
  0x15   :  { %124 = vmatpush.bf16.msra.mxu0 %v197_v10  ;;  %v111_v27 = vperm.slane %v69_v26, 0  ;;  %v112_v28 = vperm.slane %v69_v26, 1  ;;  %s165_s2 = sshll.u32 %s333_s0, 4  ;;  %vm157_vm2 = vcmp.lt.s32.totalorder %v155_v35, 256  ;;  %s166_s2 = int_to_ptr.vmem [resolvable:$true] %s165_s2 }
  0x16   :  { %137 = vmatpush.bf16.msra.mxu1 %v201_v11 }
  0x19   :  { %125 = vmatpush.bf16.msra.mxu0 %v189_v16 }
  0x1a   :  { %138 = vmatpush.bf16.msra.mxu1 %v193_v17 }
  0x1d   :  { %126 = vmatpush.bf16.msra.mxu0 %v181_v22 }
  0x1e   :  { %139 = vmatpush.bf16.msra.mxu1 %v185_v24 }
  0x20   :  { %210 = vmatmul.msk.bf16.vlgmr.msra.gmra.mxu0 %vm115_vm0, %v60_v25 }
  0x21   :  { %211 = vmatmul.msk.bf16.vlgmr.msra.gmra.mxu1 %vm115_vm0, %v60_v25 }
  0x9d   :  { %v128_v29 = vpop.f32.mrf.mxu0 }
  0x9e   :  { %v129_v30 = vadd.f32 %v128_v29, %v111_v27  ;;  %v141_v31 = vpop.f32.mrf.mxu1 }
  0x9f   :  { %v142_v32 = vadd.f32 %v141_v31, %v112_v28 }
  0xa0   :  { %v145_v33 = vmax.f32 %v129_v30, 0.0 }
  0xa1   :  { %v146_v34 = vmax.f32 %v142_v32, 0.0 }
  0xa2   :  { %v147_v36 = vmul.f32 2.0, %v145_v33 }
  0xa3   :  { %v148_v37 = vmul.f32 2.0, %v146_v34 }
  0xa5   :  { %v151_v38 = vrot.slane %v148_v37, 7  ;;  %v130_v39 = vpop.f32.mrf.mxu0 }
  0xa6   :  { %v143_v40 = vpop.f32.mrf.mxu1 }
  0xa7   :  { %v153_v41 = vsel %vm152_vm1, %v147_v36, %v151_v38 }
  0xa8   :  { %159 = vst.msk [vmem:[#allocation8] sm:$0x3] %vm157_vm2, %v153_v41 }
  0xa9   :  { %170 = dma.vmem_to_hbm [thread:$0]  %s166_s2, 32, %s168_s30, [#allocation4]  }
  0xaa   :  { %326 = dma.done.wait [#allocation4], 32  }
  0xab   :  { %327 = vsyncadd [#allocation4], 4294967264 }
  0xac   :  { %175 = vsyncpa [#allocation3], 1 }
  0xad   :  { %176 = vsyncpa [#allocation6], 1 }
  0xae   :  { %177 = vsyncpa [#allocation4], 1 }

</bundles_post_ra>
